<compile_context>
chip_gen: v7x
topology: tpu7x:2x2x1
jax: 0.10.0
libtpu: 0.0.40
codegen_flags: <defaults>
</compile_context>

<pallas_src>
import jax
import jax.numpy as jnp
from jax.experimental import pallas as pl
from jax.experimental.pallas import tpu as pltpu

EPSILON = 1e-12

# Per-tile VMEM budget (bytes).  x-tile + out-tile, each double-buffered,
# gives ~4x this as the peak footprint — well inside the 32 MiB scoped limit
# requested below and inside v7x's 64 MiB physical VMEM.
_TILE_BYTES = 4 * 1024 * 1024

# Above this total tensor size, force >= 2 grid steps so v7x megacore
# (2 TensorCores) can shard the "parallel" grid axes.  Harmless on v5e/v6e.
_MEGACORE_SPLIT_BYTES = 2 * 1024 * 1024


def _cln_kernel(x_ref, gamma_ref, beta_ref, o_ref):
    # x_ref:     (TB, TS, D)  tile of the input
    # gamma_ref: (TB, 1, D)   per-batch-row conditional scale (broadcast over TS)
    # beta_ref:  (TB, 1, D)   per-batch-row conditional shift
    # o_ref:     (TB, TS, D)  output tile
    x = x_ref[...].astype(jnp.float32)
    inv_d = jnp.float32(1.0) / jnp.float32(x.shape[-1])

    # Fused single-pass reduction: sum and sum-of-squares in one sweep.
    s1 = jnp.sum(x, axis=-1, keepdims=True)          # (TB, TS, 1)
    s2 = jnp.sum(x * x, axis=-1, keepdims=True)      # (TB, TS, 1)
    mean = s1 * inv_d
    # E[x^2] - mean^2 can go slightly negative from cancellation: clamp.
    var = jnp.maximum(s2 * inv_d - mean * mean, jnp.float32(0.0))
    inv_std = jax.lax.rsqrt(var + jnp.float32(EPSILON))

    gamma = gamma_ref[...].astype(jnp.float32)       # (TB, 1, D)
    beta = beta_ref[...].astype(jnp.float32)         # (TB, 1, D)

    # Single lane-dense store of the full tile.
    # TODO(synk): for deployed shapes where D % 128 != 0, pad D to a multiple
    # of 128 for storage (with explicit divide-by-true-D + lane mask) to avoid
    # masked partial stores; not done here since D equals the full array dim.
    o_ref[...] = ((x - mean) * inv_std * gamma + beta).astype(o_ref.dtype)


def _pick_tiles(B, S, D, itemsize):
    """Choose (TB, TS) so one tile is <= _TILE_BYTES and sublane-legal.

    TS is always either the full S or a multiple of 8, so the (TS, D) trailing
    dims of the x/out blocks satisfy the (8, 128) BlockSpec rule (D is always
    the full last dim).  TB is a leading dim and carries no such constraint.
    """
    bytes_per_row = max(1, D * itemsize)              # one (1, 1, D) row
    rows_budget = max(1, _TILE_BYTES // bytes_per_row)
    total_bytes = B * S * bytes_per_row

    if S <= rows_budget:
        # Whole sequence fits in a tile: fold batch rows in as well to
        # amortize grid-step overhead on small problems.
        TS = S
        TB = max(1, min(B, rows_budget // max(1, S)))
        # Mid-size problems: keep at least 2 grid steps so both v7x
        # TensorCores get work (grid axes are marked "parallel").
        if total_bytes > _MEGACORE_SPLIT_BYTES and TB >= B and TS >= S:
            if B >= 2:
                TB = max(1, (B + 1) // 2)
            elif S >= 16:
                TS = max(8, ((S // 2) // 8) * 8)      # sublane-legal split
    else:
        # Large sequences: one batch row per block, tile the sequence axis
        # with a multiple-of-8 tile.
        TB = 1
        TS = min(S, max(8, (rows_budget // 8) * 8))
    return TB, TS


def conditional_layer_norm(x, cond, beta_w, beta_b, gamma_w, gamma_b):
    """x: (B, S, D), cond: (B, C).

    beta_w/gamma_w: (D, C) (torch nn.Linear weight layout),
    beta_b/gamma_b: (D,).
    """
    B, S, D = x.shape

    # --- Hoisted conditional projections (tiny matmuls -> plain XLA). ---
    gamma = (cond @ gamma_w.T + gamma_b).astype(jnp.float32).reshape(B, 1, D)
    beta = (cond @ beta_w.T + beta_b).astype(jnp.float32).reshape(B, 1, D)

    TB, TS = _pick_tiles(B, S, D, jnp.dtype(x.dtype).itemsize)
    # NOTE: keep the seq-tile axis LAST and the gamma/beta index_map constant
    # in `si` — Pallas skips the DMA when the block index is unchanged, so
    # gamma/beta stay resident in VMEM across all seq tiles of a batch row.
    grid = (pl.cdiv(B, TB), pl.cdiv(S, TS))

    return pl.pallas_call(
        _cln_kernel,
        out_shape=jax.ShapeDtypeStruct((B, S, D), x.dtype),
        grid=grid,
        in_specs=[
            pl.BlockSpec((TB, TS, D), lambda bi, si: (bi, si, 0)),  # x tile
            pl.BlockSpec((TB, 1, D), lambda bi, si: (bi, 0, 0)),    # gamma rows
            pl.BlockSpec((TB, 1, D), lambda bi, si: (bi, 0, 0)),    # beta rows
        ],
        out_specs=pl.BlockSpec((TB, TS, D), lambda bi, si: (bi, si, 0)),
        compiler_params=pltpu.CompilerParams(
            # Both axes independent -> eligible for megacore sharding on v7x;
            # no-op on single-TensorCore v5e/v6e.
            dimension_semantics=("parallel", "parallel"),
            # 32 MiB: above v5e's 16 MiB default (the ~17 MiB double-buffered
            # footprint needs it) but well under v7x's 64 MiB physical VMEM.
            vmem_limit_bytes=32 * 1024 * 1024,
        ),
    )(x, gamma, beta)


def _reference(x, cond, beta_w, beta_b, gamma_w, gamma_b):
    # Pure-JAX reference mirroring the PyTorch forward exactly.
    cond_e = cond[:, None, :]                                   # unsqueeze(1)
    beta = cond_e @ beta_w.T + beta_b                           # (B, 1, D)
    gamma = cond_e @ gamma_w.T + gamma_b                        # (B, 1, D)
    mean = jnp.mean(x, axis=-1, keepdims=True)
    out = x - mean
    var = jnp.mean(out ** 2, axis=-1, keepdims=True)
    std = (var + EPSILON) ** 0.5
    out = out / std
    return out * gamma + beta


if __name__ == "__main__":
    B, S, D, C = 2, 8, 32, 16  # batch, seq, input_dim, cond_dim

    key = jax.random.PRNGKey(0)
    kx, kc, kbw, kbb, kgw, kgb = jax.random.split(key, 6)

    x = jax.random.normal(kx, (B, S, D), dtype=jnp.float32)
    cond = jax.random.normal(kc, (B, C), dtype=jnp.float32)

    # Parameter shapes follow the module's __init__ (two Linear(cond_dim, input_dim)).
    # initialize_weights() sets beta to zeros/zeros and gamma to zeros/ones; we
    # perturb around those values so the conditional path is exercised.
    beta_w = 0.1 * jax.random.normal(kbw, (D, C), dtype=jnp.float32)        # init: zeros
    beta_b = 0.1 * jax.random.normal(kbb, (D,), dtype=jnp.float32)          # init: zeros
    gamma_w = 0.1 * jax.random.normal(kgw, (D, C), dtype=jnp.float32)       # init: zeros
    gamma_b = 1.0 + 0.1 * jax.random.normal(kgb, (D,), dtype=jnp.float32)   # init: ones

    out = conditional_layer_norm(x, cond, beta_w, beta_b, gamma_w, gamma_b)
    out = jax.block_until_ready(out)

    ref = _reference(x, cond, beta_w, beta_b, gamma_w, gamma_b)
    assert out.shape == (B, S, D)
    assert jnp.allclose(out, ref, atol=1e-5, rtol=1e-5), "mismatch vs reference"

    print("KERNEL_OK")
</pallas_src>

<mosaic_0001>
module attributes {stable_mosaic.version = 11 : i64} {
  func.func @_cln_kernel(%arg0: i32, %arg1: i32, %arg2: memref<2x8x32xf32, #tpu.memory_space<vmem>>, %arg3: memref<2x1x32xf32, #tpu.memory_space<vmem>>, %arg4: memref<2x1x32xf32, #tpu.memory_space<vmem>>, %arg5: memref<2x8x32xf32, #tpu.memory_space<vmem>>) attributes {dimension_semantics = [#tpu.dimension_semantics<parallel>, #tpu.dimension_semantics<parallel>], iteration_bounds = array<i64: 1, 1>, scalar_prefetch = 0 : i64, scratch_operands = 0 : i64, tpu.core_type = #tpu.core_type<tc>, window_params = [{transform_indices = @transform_0, window_bounds = array<i64: 2, 8, 32>}, {transform_indices = @transform_1, window_bounds = array<i64: 2, 1, 32>}, {transform_indices = @transform_2, window_bounds = array<i64: 2, 1, 32>}, {transform_indices = @transform_3, window_bounds = array<i64: 2, 8, 32>}]} {
    %c0 = arith.constant 0 : index
    %c0_0 = arith.constant 0 : index
    %c0_1 = arith.constant 0 : index
    %0 = vector.load %arg2[%c0, %c0_0, %c0_1] : memref<2x8x32xf32, #tpu.memory_space<vmem>>, vector<2x8x32xf32>
    %cst = arith.constant 1.000000e+00 : f32
    %cst_2 = arith.constant 3.200000e+01 : f32
    %1 = arith.divf %cst, %cst_2 : f32
    %cst_3 = arith.constant dense<0.000000e+00> : vector<2x8xf32>
    %2 = vector.multi_reduction <add>, %0, %cst_3 [2] : vector<2x8x32xf32> to vector<2x8xf32>
    %3 = vector.shape_cast %2 : vector<2x8xf32> to vector<2x8x1xf32>
    %4 = arith.mulf %0, %0 : vector<2x8x32xf32>
    %cst_4 = arith.constant dense<0.000000e+00> : vector<2x8xf32>
    %5 = vector.multi_reduction <add>, %4, %cst_4 [2] : vector<2x8x32xf32> to vector<2x8xf32>
    %6 = vector.shape_cast %5 : vector<2x8xf32> to vector<2x8x1xf32>
    %7 = vector.broadcast %1 : f32 to vector<2x8x1xf32>
    %8 = arith.mulf %3, %7 : vector<2x8x1xf32>
    %9 = vector.broadcast %1 : f32 to vector<2x8x1xf32>
    %10 = arith.mulf %6, %9 : vector<2x8x1xf32>
    %11 = arith.mulf %8, %8 : vector<2x8x1xf32>
    %12 = arith.subf %10, %11 : vector<2x8x1xf32>
    %cst_5 = arith.constant 0.000000e+00 : f32
    %13 = vector.broadcast %cst_5 : f32 to vector<2x8x1xf32>
    %14 = arith.maximumf %12, %13 : vector<2x8x1xf32>
    %cst_6 = arith.constant 9.99999996E-13 : f32
    %15 = vector.broadcast %cst_6 : f32 to vector<2x8x1xf32>
    %16 = arith.addf %14, %15 : vector<2x8x1xf32>
    %17 = math.rsqrt %16 : vector<2x8x1xf32>
    %c0_7 = arith.constant 0 : index
    %c0_8 = arith.constant 0 : index
    %c0_9 = arith.constant 0 : index
    %18 = vector.load %arg3[%c0_7, %c0_8, %c0_9] : memref<2x1x32xf32, #tpu.memory_space<vmem>>, vector<2x1x32xf32>
    %c0_10 = arith.constant 0 : index
    %c0_11 = arith.constant 0 : index
    %c0_12 = arith.constant 0 : index
    %19 = vector.load %arg4[%c0_10, %c0_11, %c0_12] : memref<2x1x32xf32, #tpu.memory_space<vmem>>, vector<2x1x32xf32>
    %20 = vector.broadcast %8 : vector<2x8x1xf32> to vector<2x8x32xf32>
    %21 = arith.subf %0, %20 : vector<2x8x32xf32>
    %22 = vector.broadcast %17 : vector<2x8x1xf32> to vector<2x8x32xf32>
    %23 = arith.mulf %21, %22 : vector<2x8x32xf32>
    %24 = vector.broadcast %18 : vector<2x1x32xf32> to vector<2x8x32xf32>
    %25 = arith.mulf %23, %24 : vector<2x8x32xf32>
    %26 = vector.broadcast %19 : vector<2x1x32xf32> to vector<2x8x32xf32>
    %27 = arith.addf %25, %26 : vector<2x8x32xf32>
    %c0_13 = arith.constant 0 : index
    %c0_14 = arith.constant 0 : index
    %c0_15 = arith.constant 0 : index
    %28 = vector.load %arg5[%c0_13, %c0_14, %c0_15] : memref<2x8x32xf32, #tpu.memory_space<vmem>>, vector<2x8x32xf32>
    tpu.vector_store %arg5[%c0_13, %c0_14, %c0_15], %27 {strides = array<i32>} : memref<2x8x32xf32, #tpu.memory_space<vmem>>, vector<2x8x32xf32>,
    return
  }
  func.func @transform_0(%arg0: i32, %arg1: i32) -> (i32, i32, i32) {
    %c0_i32 = arith.constant 0 : i32
    %c0_i32_0 = arith.constant 0 : i32
    return %arg0, %arg1, %c0_i32 : i32, i32, i32
  }
  func.func @transform_1(%arg0: i32, %arg1: i32) -> (i32, i32, i32) {
    %c0_i32 = arith.constant 0 : i32
    %c0_i32_0 = arith.constant 0 : i32
    %c0_i32_1 = arith.constant 0 : i32
    return %arg0, %c0_i32, %c0_i32_0 : i32, i32, i32
  }
  func.func @transform_2(%arg0: i32, %arg1: i32) -> (i32, i32, i32) {
    %c0_i32 = arith.constant 0 : i32
    %c0_i32_0 = arith.constant 0 : i32
    %c0_i32_1 = arith.constant 0 : i32
    return %arg0, %c0_i32, %c0_i32_0 : i32, i32, i32
  }
  func.func @transform_3(%arg0: i32, %arg1: i32) -> (i32, i32, i32) {
    %c0_i32 = arith.constant 0 : i32
    %c0_i32_0 = arith.constant 0 : i32
    return %arg0, %arg1, %c0_i32 : i32, i32, i32
  }
}

</mosaic_0001>

<bundles_post_ra>
// kernel: tpu_custom_call.1
= control target key start
LH: loop header
LB: loop body
LE: loop exit
PB: predicated region body
PF: predicated region fallthrough
CT: control target
= control target key end

     0   :  { %8 = vsyncpa [#allocation3], 0  ;;  %s247_s0 = inlined_call_operand.hbm [shape: f32[2,8,32], index: 0, kind: input, shape index: {}]   ;;  %s248_s1 = inlined_call_operand.vmem [shape: f32[2,1,32], index: 1, kind: input, shape index: {}]   ;;  %s249_s2 = inlined_call_operand.vmem [shape: f32[2,1,32], index: 2, kind: input, shape index: {}]   ;;  %s250_s3 = inlined_call_operand.hbm [shape: f32[2,8,32], index: 3, kind: output, shape index: {}]  }
   0x1   :  { %9 = vsyncpa [#allocation4], 0  ;;  %s175_s12 = smov [#allocation2]   ;;  %s127_s16 = scalar_lea.hbm %s247_s0, 256 }
   0x2   :  { %s15_s13 = sshll.u32 %s175_s12, 4  ;;  %p128_p0 = scmp.ne.s32.totalorder %s247_s0, %s127_s16  ;;  %s16_s13 = int_to_ptr.vmem [resolvable:$true] %s15_s13 }
   0x3   :  { %p131_p1 = scmp.lt.u32.totalorder %s127_s16, %s247_s0 }
   0x5   :  { %p133_p2 = pnand %p131_p1, %p128_p0 }
   0x7   :  { %136 = shalt.err (!%p133_p2)
}
   0x8   :  { %s137_s21 = scalar_lea.vmem %s16_s13, 256  ;;  %p142_p4 = scmp.lt.s32.totalorder %s16_s13, %s16_s13 }
   0x9   :  { %p138_p3 = scmp.ne.s32.totalorder %s16_s13, %s137_s21  ;;  %p143_p5 = scmp.lt.s32.totalorder %s137_s21, %s137_s21 }
   0xb   :  { %p144_p6 = por %p143_p5, %p142_p4 }
   0xd   :  { %p145_p7 = pnand %p144_p6, %p138_p3 }
   0xf   :  { %148 = shalt.err (!%p145_p7)
}
  0x10   :  { %s176_s22 = smov 128   ;;  %s177_s23 = smov 8  }
  0x11   :  { %21 = dma.hbm_to_vmem [thread:$0]  %s247_s0, 256, %s16_s13, [#allocation3], %s176_s22, %s176_s22, %s177_s23  }
  0x12   :  { %171 = dma.done.wait [#allocation3], 256  }
  0x13   :  { %172 = vsyncadd [#allocation3], 4294967040  ;;  %vm31_vm0 = vcmask 261120   ;;  %v29_v0 = vld [vmem:[#allocation2] sm:$0xff]  ;;  %v30_v1 = vld [vmem:[#allocation2 + $0x8] sm:$0xff]  ;;  %s178_s6 = smov [#allocation5]  }
  0x14   :  { %v32_v2 = vsel %vm31_vm0, %v29_v0, 0.0  ;;  %v38_v3 = vmul.f32 %v29_v0, %v29_v0  ;;  %v39_v4 = vmul.f32 %v30_v1, %v30_v1  ;;  %v35_v6 = vsel %vm31_vm0, %v30_v1, 0.0  ;;  %v115_v26 = vld [vmem:[%s248_s1] ss:$0 sm:$0xff]  ;;  %v116_v32 = vld [vmem:[%s248_s1 + $0x1] ss:$0 sm:$0xff] }
  0x15   :  { %33 = vadd.xlane.f32.xlu0 %v32_v2  ;;  %v117_v28 = vld [vmem:[%s249_s2] ss:$0 sm:$0xff]  ;;  %v118_v35 = vld [vmem:[%s249_s2 + $0x1] ss:$0 sm:$0xff]  ;;  %s103_s7 = sshll.u32 %s178_s6, 4  ;;  %s104_s7 = int_to_ptr.vmem [resolvable:$true] %s103_s7 }
  0x16   :  { %v40_v5 = vsel %vm31_vm0, %v38_v3, 0.0  ;;  %v43_v7 = vsel %vm31_vm0, %v39_v4, 0.0  ;;  %s149_s8 = scalar_lea.vmem %s104_s7, 256  ;;  %p154_p9 = scmp.lt.s32.totalorder %s104_s7, %s104_s7 }
  0x17   :  { %41 = vadd.xlane.f32.xlu1 %v40_v5  ;;  %p150_p8 = scmp.ne.s32.totalorder %s104_s7, %s149_s8  ;;  %p155_p10 = scmp.lt.s32.totalorder %s149_s8, %s149_s8 }
  0x19   :  { %36 = vadd.xlane.f32.xlu0 %v35_v6  ;;  %p156_p11 = por %p155_p10, %p154_p9 }
  0x1b   :  { %44 = vadd.xlane.f32.xlu1 %v43_v7  ;;  %p157_p12 = pnand %p156_p11, %p150_p8 }
  0xa2   :  { %v34_v8 = vpop.xlane.xlu0 %33 }
  0xa3   :  { %v46_v9 = vmul.f32 0.03125, %v34_v8 }
  0xa4   :  { %v42_v10 = vpop.xlane.xlu1 %41 }
  0xa5   :  { %v50_v11 = vmul.f32 %v46_v9, %v46_v9  ;;  %v48_v12 = vmul.f32 0.03125, %v42_v10  ;;  %v64_v24 = vsub.f32 %v29_v0, %v46_v9 }
  0xa6   :  { %v37_v13 = vpop.xlane.xlu0 %36 }
  0xa7   :  { %v52_v14 = vsub.f32 %v48_v12, %v50_v11  ;;  %v47_v15 = vmul.f32 0.03125, %v37_v13 }
  0xa8   :  { %v45_v16 = vpop.xlane.xlu1 %44 }
  0xa9   :  { %v54_v17 = vmax.f32 %v52_v14, 0.0  ;;  %v51_v18 = vmul.f32 %v47_v15, %v47_v15  ;;  %v49_v19 = vmul.f32 0.03125, %v45_v16  ;;  %v65_v29 = vsub.f32 %v30_v1, %v47_v15 }
  0xab   :  { %v56_v20 = vadd.f32 1e-12, %v54_v17  ;;  %v53_v21 = vsub.f32 %v49_v19, %v51_v18 }
  0xad   :  { %123 = vrsqrt.f32 %v56_v20  ;;  %v55_v22 = vmax.f32 %v53_v21, 0.0 }
  0xaf   :  { %v57_v23 = vadd.f32 1e-12, %v55_v22 }
  0xb1   :  { %125 = vrsqrt.f32 %v57_v23 }
  0xb7   :  { %v124_v25 = vpop.eup %123 }
  0xb8   :  { %v66_v27 = vmul.f32 %v124_v25, %v64_v24 }
  0xba   :  { %v80_v30 = vmul.f32 %v115_v26, %v66_v27 }
  0xbb   :  { %v126_v31 = vpop.eup %125 }
  0xbc   :  { %v67_v33 = vmul.f32 %v126_v31, %v65_v29  ;;  %v94_v34 = vadd.f32 %v117_v28, %v80_v30 }
  0xbe   :  { %v81_v36 = vmul.f32 %v116_v32, %v67_v33  ;;  %96 = vst.msk [vmem:[#allocation5] sm:$0xff] %vm31_vm0, %v94_v34 }
  0xc0   :  { %v95_v37 = vadd.f32 %v118_v35, %v81_v36 }
  0xc2   :  { %97 = vst.msk [vmem:[#allocation5 + $0x8] sm:$0xff] %vm31_vm0, %v95_v37 }
  0xc3   :  { %160 = shalt.err (!%p157_p12)
}
  0xc4   :  { %s161_s2 = scalar_lea.hbm %s250_s3, 256 }
  0xc5   :  { %p162_p13 = scmp.ne.s32.totalorder %s250_s3, %s161_s2  ;;  %p165_p0 = scmp.lt.u32.totalorder %s161_s2, %s250_s3 }
  0xc7   :  { %p167_p1 = pnand %p165_p0, %p162_p13 }
  0xc9   :  { %170 = shalt.err (!%p167_p1)
}
  0xca   :  { %109 = dma.vmem_to_hbm [thread:$0]  %s104_s7, 256, %s250_s3, [#allocation4], %s176_s22, %s176_s22, %s177_s23  }
  0xcb   :  { %173 = dma.done.wait [#allocation4], 256  }
  0xcc   :  { %174 = vsyncadd [#allocation4], 4294967040 }
  0xcd   :  { %113 = vsyncpa [#allocation3], 1 }
  0xce   :  { %114 = vsyncpa [#allocation4], 1 }

</bundles_post_ra>
